<compile_context>
chip_gen: v6e
topology: v6e:2x2x1
jax: 0.10.0
libtpu: 0.0.40
codegen_flags: <defaults>
</compile_context>

<pallas_src>
import math

import jax
import jax.numpy as jnp
from jax.experimental import pallas as pl
from jax.experimental.pallas import tpu as pltpu

_LANES = 128
_MAX_PACK_LANES = 16384          # widest packed row we are willing to build (64 KiB @ f32)
_MAX_FALLBACK_WIDTH = 2048       # lane-tile for the 2-D fallback (multiple of 128)


def _affine_kernel(es_ref, sh_ref, x_ref, y_ref):
    # es_ref / sh_ref: (1, W) float32, broadcast over rows.
    # x_ref / y_ref:   (TS, W) in the caller's dtype.
    x = x_ref[...].astype(jnp.float32)
    y_ref[...] = (es_ref[...] * x + sh_ref[...]).astype(y_ref.dtype)


def _plan_vmem():
    """Generation-aware (target_tile_bytes, vmem_limit_bytes)."""
    vmem_cap = 128 * 1024 * 1024
    try:
        info = pltpu.get_tpu_info()
        vmem_cap = int(getattr(info, "vmem_capacity_bytes", vmem_cap))
    except Exception:
        pass
    # Leave headroom below physical VMEM; cap at 64 MiB (plenty for this pipeline).
    vmem_limit = max(32 * 1024 * 1024, min(int(0.75 * vmem_cap), 64 * 1024 * 1024))
    # Pipeline footprint ~= (x + y) * 2 buffers * tile, plus small resident params.
    target_bytes = max(4 * 1024 * 1024, vmem_limit // 6)
    return target_bytes, vmem_limit


def _sublane_multiple(dtype):
    itemsize = jnp.dtype(dtype).itemsize
    return max(8, 32 // max(1, itemsize))   # 8 (f32) / 16 (bf16) / 32 (int8, fp8)


def _choose_row_tile(rows, row_bytes, sub, target_bytes):
    """Row tile: multiple of `sub` (or the full extent), ~target bytes, >= ~4 grid steps
    for inputs larger than two target tiles (keeps both v7x TCs busy & pipeline overlap)."""
    if rows <= sub:
        return rows
    ts = max(sub, (target_bytes // max(1, row_bytes)) // sub * sub)
    if rows * row_bytes > 2 * target_bytes:
        quarter = (rows // 4) // sub * sub
        if quarter >= sub:
            ts = min(ts, quarter)
    return int(min(ts, rows))


def _run_packed(x2, es2, sh2, sub, target_bytes, vmem_limit):
    """x2: (rows, W) with W a multiple of 128; es2/sh2: (1, W) float32 patterns."""
    rows, width = x2.shape
    row_bytes = width * jnp.dtype(x2.dtype).itemsize
    ts = _choose_row_tile(rows, row_bytes, sub, target_bytes)
    grid = (pl.cdiv(rows, ts),)
    return pl.pallas_call(
        _affine_kernel,
        out_shape=jax.ShapeDtypeStruct((rows, width), x2.dtype),
        grid=grid,
        in_specs=[
            # Small params: whole-array resident in VMEM (not pipelined per step).
            pl.BlockSpec(memory_space=pltpu.MemorySpace.VMEM),
            pl.BlockSpec(memory_space=pltpu.MemorySpace.VMEM),
            pl.BlockSpec((ts, width), lambda i: (i, 0)),
        ],
        out_specs=pl.BlockSpec((ts, width), lambda i: (i, 0)),
        compiler_params=pltpu.CompilerParams(
            dimension_semantics=("parallel",),
            vmem_limit_bytes=vmem_limit,
        ),
    )(es2, sh2, x2)


def _run_tiled_2d(x, es2, sh2, sub, target_bytes, vmem_limit):
    """Fallback for dims too wide to repack: 2-D (row, lane) tiling over (samples, dim)."""
    samples, dim = x.shape
    itemsize = jnp.dtype(x.dtype).itemsize
    wt = dim if dim <= _MAX_FALLBACK_WIDTH else _MAX_FALLBACK_WIDTH  # full extent or mult of 128
    ts = _choose_row_tile(samples, wt * itemsize, sub, target_bytes)
    grid = (pl.cdiv(samples, ts), pl.cdiv(dim, wt))
    return pl.pallas_call(
        _affine_kernel,
        out_shape=jax.ShapeDtypeStruct((samples, dim), x.dtype),
        grid=grid,
        in_specs=[
            pl.BlockSpec((1, wt), lambda i, j: (0, j)),
            pl.BlockSpec((1, wt), lambda i, j: (0, j)),
            pl.BlockSpec((ts, wt), lambda i, j: (i, j)),
        ],
        out_specs=pl.BlockSpec((ts, wt), lambda i, j: (i, j)),
        compiler_params=pltpu.CompilerParams(
            dimension_semantics=("parallel", "parallel"),
            vmem_limit_bytes=vmem_limit,
        ),
    )(es2, sh2, x)


def _affine_apply(x, exp_scale_f32, shift_f32):
    """y = exp(scale) * x + shift, elementwise over (samples, dim)."""
    samples, dim = x.shape
    sub = _sublane_multiple(x.dtype)
    target_bytes, vmem_limit = _plan_vmem()

    g = math.gcd(dim, _LANES)
    width = dim * (_LANES // g)              # lcm(dim, 128): lane-dense packed width
    if width <= _MAX_PACK_LANES:
        spr = width // dim                   # samples per packed row
        bulk = (samples // spr) * spr        # aligned bulk; 0 <= tail < spr
        reps = width // dim
        es2 = jnp.tile(exp_scale_f32, (reps,)).reshape(1, width)
        sh2 = jnp.tile(shift_f32, (reps,)).reshape(1, width)

        yb = None
        if bulk > 0:
            xb = x if bulk == samples else x[:bulk]   # copy-free when aligned
            rows = bulk // spr
            y2 = _run_packed(xb.reshape(rows, width), es2, sh2, sub, target_bytes, vmem_limit)
            yb = y2.reshape(bulk, dim)
            if bulk == samples:
                return yb

        # Tiny tail (< spr samples): plain JAX, f32 math, same semantics.
        xt = x[bulk:].astype(jnp.float32)
        yt = (exp_scale_f32 * xt + shift_f32).astype(x.dtype)
        if yb is None:
            return yt
        return jnp.concatenate([yb, yt], axis=0)

    # dim too wide / awkward to repack -> direct 2-D tiled kernel (masked edge lanes
    # are a negligible fraction at these widths).
    return _run_tiled_2d(x, exp_scale_f32.reshape(1, dim), shift_f32.reshape(1, dim),
                         sub, target_bytes, vmem_limit)


def affine_forward(x, scale, shift):
    """x: (samples, dim); scale, shift: (dim,).
    Returns (y (samples, dim) in x.dtype, log_det_jacobian (samples,) float32)."""
    samples, _ = x.shape
    scale_f32 = scale.astype(jnp.float32)
    shift_f32 = shift.astype(jnp.float32)
    exp_scale = jnp.exp(scale_f32)

    # log|det J| = sum(scale): independent of x -> kept out of the kernel entirely.
    log_det = jnp.full((samples,), jnp.sum(scale_f32), dtype=jnp.float32)

    y = _affine_apply(x, exp_scale, shift_f32)
    return y, log_det


# TODO(synk): Affine.inverse ( x = (y - shift) / exp(scale) ) not implemented; only the
# forward pass was requested. It would be the same kernel with precomputed 1/exp(scale).


if __name__ == "__main__":
    key = jax.random.PRNGKey(0)

    def check(samples, dim, dtype, atol):
        kx, ks, kb = jax.random.split(jax.random.fold_in(key, samples * 1000 + dim), 3)
        x = jax.random.normal(kx, (samples, dim), dtype=jnp.float32).astype(dtype)
        scale = 0.1 * jax.random.normal(ks, (dim,), dtype=jnp.float32)
        shift = 0.1 * jax.random.normal(kb, (dim,), dtype=jnp.float32)

        y, ld = affine_forward(x, scale, shift)
        jax.block_until_ready((y, ld))

        y_ref = (jnp.exp(scale) * x.astype(jnp.float32) + shift).astype(dtype)
        ld_ref = jnp.full((samples,), jnp.sum(scale), dtype=jnp.float32)
        assert y.shape == (samples, dim) and y.dtype == jnp.dtype(dtype)
        assert jnp.allclose(y.astype(jnp.float32), y_ref.astype(jnp.float32),
                            atol=atol, rtol=atol), (samples, dim, dtype)
        assert jnp.allclose(ld, ld_ref, atol=1e-5, rtol=1e-5), (samples, dim, dtype)

    # deepchem docstring example: dim=2, samples=96 (packed path, 32-sample JAX tail).
    check(96, 2, jnp.float32, 1e-6)
    # fully aligned packed path (no tail, zero extra copies).
    check(256, 2, jnp.float32, 1e-6)
    # generalized lcm packing: dim=100 -> packed width 3200 lanes.
    check(64, 100, jnp.float32, 1e-6)
    # 2-D tiled fallback: lcm(129, 128) too wide to pack.
    check(64, 129, jnp.float32, 1e-6)
    # bf16 input: f32 math in-kernel, bf16 output, 16-row sublane rounding.
    check(128, 2, jnp.bfloat16, 2e-2)

    print("KERNEL_OK")
</pallas_src>

<mosaic_0001>
module attributes {stable_mosaic.version = 11 : i64} {
  func.func @_affine_kernel(%arg0: i32, %arg1: memref<1x128xf32, #tpu.memory_space<vmem>>, %arg2: memref<1x128xf32, #tpu.memory_space<vmem>>, %arg3: memref<1x128xf32, #tpu.memory_space<vmem>>, %arg4: memref<1x128xf32, #tpu.memory_space<vmem>>) attributes {dimension_semantics = [#tpu.dimension_semantics<parallel>], iteration_bounds = array<i64: 1>, scalar_prefetch = 0 : i64, scratch_operands = 0 : i64, tpu.core_type = #tpu.core_type<tc>, window_params = [{pipeline_mode = #tpu.pipeline_mode<synchronous>, transform_indices = @transform_0, window_bounds = array<i64: 1, 128>}, {pipeline_mode = #tpu.pipeline_mode<synchronous>, transform_indices = @transform_1, window_bounds = array<i64: 1, 128>}, {transform_indices = @transform_2, window_bounds = array<i64: 1, 128>}, {transform_indices = @transform_3, window_bounds = array<i64: 1, 128>}]} {
    %c0 = arith.constant 0 : index
    %c0_0 = arith.constant 0 : index
    %0 = vector.load %arg3[%c0, %c0_0] : memref<1x128xf32, #tpu.memory_space<vmem>>, vector<1x128xf32>
    %c0_1 = arith.constant 0 : index
    %c0_2 = arith.constant 0 : index
    %1 = vector.load %arg1[%c0_1, %c0_2] : memref<1x128xf32, #tpu.memory_space<vmem>>, vector<1x128xf32>
    %2 = arith.mulf %1, %0 : vector<1x128xf32>
    %c0_3 = arith.constant 0 : index
    %c0_4 = arith.constant 0 : index
    %3 = vector.load %arg2[%c0_3, %c0_4] : memref<1x128xf32, #tpu.memory_space<vmem>>, vector<1x128xf32>
    %4 = arith.addf %2, %3 : vector<1x128xf32>
    %c0_5 = arith.constant 0 : index
    %c0_6 = arith.constant 0 : index
    %5 = vector.load %arg4[%c0_5, %c0_6] : memref<1x128xf32, #tpu.memory_space<vmem>>, vector<1x128xf32>
    tpu.vector_store %arg4[%c0_5, %c0_6], %4 {strides = array<i32>} : memref<1x128xf32, #tpu.memory_space<vmem>>, vector<1x128xf32>,
    return
  }
  func.func @transform_0(%arg0: i32) -> (i32, i32) {
    %c0_i32 = arith.constant 0 : i32
    %c0_i32_0 = arith.constant 0 : i32
    %c0_i32_1 = arith.constant 0 : i32
    return %c0_i32, %c0_i32_0 : i32, i32
  }
  func.func @transform_1(%arg0: i32) -> (i32, i32) {
    %c0_i32 = arith.constant 0 : i32
    %c0_i32_0 = arith.constant 0 : i32
    %c0_i32_1 = arith.constant 0 : i32
    return %c0_i32, %c0_i32_0 : i32, i32
  }
  func.func @transform_2(%arg0: i32) -> (i32, i32) {
    %c0_i32 = arith.constant 0 : i32
    %c0_i32_0 = arith.constant 0 : i32
    return %arg0, %c0_i32 : i32, i32
  }
  func.func @transform_3(%arg0: i32) -> (i32, i32) {
    %c0_i32 = arith.constant 0 : i32
    %c0_i32_0 = arith.constant 0 : i32
    return %arg0, %c0_i32 : i32, i32
  }
}

</mosaic_0001>

<bundles_post_ra>
// kernel: tpu_custom_call.1
= control target key start
LH: loop header
LB: loop body
LE: loop exit
PB: predicated region body
PF: predicated region fallthrough
CT: control target
= control target key end

     0   :  { %8 = vsyncpa [#allocation3], 0  ;;  %s128_s0 = inlined_call_operand.hbm [shape: f32[1,128], index: 0, kind: input, shape index: {}]   ;;  %s129_s1 = inlined_call_operand.vmem [shape: f32[1,128], index: 1, kind: input, shape index: {}]   ;;  %s130_s2 = inlined_call_operand.vmem [shape: f32[1,128], index: 2, kind: input, shape index: {}]   ;;  %s131_s3 = inlined_call_operand.hbm [shape: f32[1,128], index: 3, kind: output, shape index: {}]  }
   0x1   :  { %9 = vsyncpa [#allocation4], 0  ;;  %s94_s12 = smov [#allocation2]  }
   0x2   :  { %s16_s13 = sshll.u32 %s94_s12, 4  ;;  %s17_s13 = int_to_ptr.vmem [resolvable:$true] %s16_s13 }
   0x3   :  { %s58_s14 = scalar_lea.vmem %s17_s13, 16  ;;  %s62_s15 = scalar_lea.vmem %s17_s13, 32 }
   0x4   :  { %p59_p0 = scmp.ne.s32.totalorder %s17_s13, %s58_s14  ;;  %p63_p1 = scmp.lt.s32.totalorder %s17_s13, %s17_s13 }
   0x5   :  { %p64_p2 = scmp.lt.s32.totalorder %s62_s15, %s58_s14 }
   0x7   :  { %p65_p3 = por %p64_p2, %p63_p1 }
   0x9   :  { %p66_p4 = pnand %p65_p3, %p59_p0 }
   0xb   :  { %69 = shalt.err (!%p66_p4)
}
   0xc   :  { %19 = dma.hbm_to_vmem [thread:$0]  %s128_s0, 16, %s17_s13, [#allocation3]  }
   0xd   :  { %90 = dma.done.wait [#allocation3], 16  }
   0xe   :  { %91 = vsyncadd [#allocation3], 4294967280  ;;  %s95_s18 = smov [#allocation5]   ;;  %v27_v0 = vld [vmem:[%s130_s2] sm:$0x1] }
   0xf   :  { %s39_s19 = sshll.u32 %s95_s18, 4  ;;  %v28_v1 = vld [vmem:[#allocation2] sm:$0x1]  ;;  %s40_s19 = int_to_ptr.vmem [resolvable:$true] %s39_s19 }
  0x10   :  { %v30_v2 = vld [vmem:[%s129_s1] sm:$0x1]  ;;  %v29_v3 = vmul.f32 %v28_v1, %v27_v0  ;;  %s70_s24 = scalar_lea.vmem %s40_s19, 16  ;;  %s74_s0 = scalar_lea.vmem %s40_s19, 32 }
  0x11   :  { %p71_p5 = scmp.ne.s32.totalorder %s40_s19, %s70_s24  ;;  %p75_p6 = scmp.lt.s32.totalorder %s40_s19, %s40_s19 }
  0x12   :  { %v31_v4 = vadd.f32 %v30_v2, %v29_v3  ;;  %p76_p7 = scmp.lt.s32.totalorder %s74_s0, %s70_s24 }
  0x14   :  { %32 = vst [vmem:[#allocation5] sm:$0x1] %v31_v4  ;;  %p77_p8 = por %p76_p7, %p75_p6 }
  0x16   :  { %p78_p9 = pnand %p77_p8, %p71_p5 }
  0x18   :  { %81 = shalt.err (!%p78_p9)
}
  0x19   :  { %42 = dma.vmem_to_hbm [thread:$0]  %s40_s19, 16, %s131_s3, [#allocation4]  }
  0x1a   :  { %92 = dma.done.wait [#allocation4], 16  }
  0x1b   :  { %93 = vsyncadd [#allocation4], 4294967280 }
  0x1c   :  { %46 = vsyncpa [#allocation3], 1 }
  0x1d   :  { %47 = vsyncpa [#allocation4], 1 }

</bundles_post_ra>
